<compile_context>
chip_gen: v5e
topology: v5e:2x2
jax: 0.10.0
libtpu: 0.0.40
codegen_flags: <defaults>
</compile_context>

<pallas_src>
import jax
import jax.numpy as jnp
from jax.experimental import pallas as pl
from jax.experimental.pallas import tpu as pltpu

# ----------------------------- config (module hyperparams) -----------------------------
EMBED_DIM = 32
EXPANSION_FACTOR = 2
EXPANDED_DIM = int(EMBED_DIM * EXPANSION_FACTOR)   # 64
OUTPUT_DIM = 16
NUM_LAYERS = 3
LN_EPS = 1e-5

MAX_ROW_TILE = 512  # rows per grid step (f32 sublane-aligned; <1 MiB VMEM/step)


def _round_up(x, m):
    return ((x + m - 1) // m) * m


# ----------------------------- Pallas kernel -----------------------------
def base_head_kernel(x_ref, w1_ref, b1_ref, w2_ref, b2_ref, w3_ref, b3_ref,
                     gamma_ref, beta_ref, o_ref):
    x = x_ref[...].astype(jnp.float32)

    # Read small params once (no re-broadcast if the body is ever chunked into a loop).
    b1 = b1_ref[...]
    b2 = b2_ref[...]
    b3 = b3_ref[...]
    gamma = gamma_ref[...]
    beta = beta_ref[...]

    # layer 0: Linear(embed_dim -> expanded_dim) + ReLU
    h = jnp.dot(x, w1_ref[...], preferred_element_type=jnp.float32) + b1
    h = jnp.maximum(h, 0.0)

    # layer 1: Linear(expanded_dim -> expanded_dim) + ReLU
    h = jnp.dot(h, w2_ref[...], preferred_element_type=jnp.float32) + b2
    h = jnp.maximum(h, 0.0)

    # layer 2: Linear(expanded_dim -> output_dim)   (no output_activation)
    y = jnp.dot(h, w3_ref[...], preferred_element_type=jnp.float32) + b3

    # output_norm: LayerNorm over last dim (biased variance, eps=1e-5).
    # mean/var reductions -> XLU, rsqrt -> EUP: both off the VPU critical path.
    mu = jnp.mean(y, axis=-1, keepdims=True)
    d = y - mu
    var = jnp.mean(d * d, axis=-1, keepdims=True)
    inv = jax.lax.rsqrt(var + LN_EPS)
    o_ref[...] = ((d * inv) * gamma + beta).astype(o_ref.dtype)


# ----------------------------- wrapper -----------------------------
def base_head_forward(x, params):
    """x: (batch, seq, embed_dim) float32 -> (batch, seq, output_dim) float32."""
    B, T, D = x.shape
    assert D == EMBED_DIM
    M = B * T
    x2 = x.reshape(M, D)

    # Adaptive row tile: big for throughput, shrunk for tiny inputs, always
    # sublane (8) aligned. Pad the row dim so any batch*seq size is supported.
    row_tile = min(MAX_ROW_TILE, _round_up(M, 8))
    M_pad = _round_up(M, row_tile)
    if M_pad != M:
        x2 = jnp.pad(x2, ((0, M_pad - M), (0, 0)))

    w1, b1, w2, b2, w3, b3, gamma, beta = params

    grid = (M_pad // row_tile,)

    flops = 2 * M_pad * (EMBED_DIM * EXPANDED_DIM
                         + EXPANDED_DIM * EXPANDED_DIM
                         + EXPANDED_DIM * OUTPUT_DIM)
    weight_bytes = 4 * (EMBED_DIM * EXPANDED_DIM + EXPANDED_DIM
                        + EXPANDED_DIM * EXPANDED_DIM + EXPANDED_DIM
                        + EXPANDED_DIM * OUTPUT_DIM + OUTPUT_DIM
                        + 2 * OUTPUT_DIM)
    cost = pl.CostEstimate(
        flops=flops,
        transcendentals=M_pad,  # one rsqrt per row
        bytes_accessed=4 * M_pad * (EMBED_DIM + OUTPUT_DIM) + weight_bytes,
    )

    out2 = pl.pallas_call(
        base_head_kernel,
        out_shape=jax.ShapeDtypeStruct((M_pad, OUTPUT_DIM), x.dtype),
        grid_spec=pltpu.PrefetchScalarGridSpec(
            num_scalar_prefetch=0,
            grid=grid,
            in_specs=[
                pl.BlockSpec((row_tile, EMBED_DIM), lambda i: (i, 0)),        # x tile
                pl.BlockSpec((EMBED_DIM, EXPANDED_DIM), lambda i: (0, 0)),    # W1
                pl.BlockSpec((1, EXPANDED_DIM), lambda i: (0, 0)),            # b1
                pl.BlockSpec((EXPANDED_DIM, EXPANDED_DIM), lambda i: (0, 0)), # W2
                pl.BlockSpec((1, EXPANDED_DIM), lambda i: (0, 0)),            # b2
                pl.BlockSpec((EXPANDED_DIM, OUTPUT_DIM), lambda i: (0, 0)),   # W3
                pl.BlockSpec((1, OUTPUT_DIM), lambda i: (0, 0)),              # b3
                pl.BlockSpec((1, OUTPUT_DIM), lambda i: (0, 0)),              # LN gamma
                pl.BlockSpec((1, OUTPUT_DIM), lambda i: (0, 0)),              # LN beta
            ],
            out_specs=pl.BlockSpec((row_tile, OUTPUT_DIM), lambda i: (i, 0)),
        ),
        compiler_params=pltpu.CompilerParams(
            dimension_semantics=("parallel",),   # row grid shards across v7x's 2 TCs
        ),
        cost_estimate=cost,
    )(x2, w1, b1, w2, b2, w3, b3, gamma, beta)

    return out2[:M].reshape(B, T, OUTPUT_DIM)


# ----------------------------- deterministic param init -----------------------------
def init_params(key):
    """Mimics nn.Linear default init (uniform +/- 1/sqrt(fan_in)); LN gamma=1, beta=0."""
    def linear(key, fan_in, fan_out):
        kw, kb = jax.random.split(key)
        bound = 1.0 / jnp.sqrt(float(fan_in))
        w = jax.random.uniform(kw, (fan_in, fan_out), jnp.float32, -bound, bound)
        b = jax.random.uniform(kb, (1, fan_out), jnp.float32, -bound, bound)
        return w, b

    k1, k2, k3 = jax.random.split(key, 3)
    w1, b1 = linear(k1, EMBED_DIM, EXPANDED_DIM)
    w2, b2 = linear(k2, EXPANDED_DIM, EXPANDED_DIM)
    w3, b3 = linear(k3, EXPANDED_DIM, OUTPUT_DIM)
    gamma = jnp.ones((1, OUTPUT_DIM), jnp.float32)
    beta = jnp.zeros((1, OUTPUT_DIM), jnp.float32)
    return (w1, b1, w2, b2, w3, b3, gamma, beta)


# ----------------------------- reference (pure JAX) -----------------------------
def reference_forward(x, params):
    w1, b1, w2, b2, w3, b3, gamma, beta = params
    h = jnp.maximum(x @ w1 + b1[0], 0.0)
    h = jnp.maximum(h @ w2 + b2[0], 0.0)
    y = h @ w3 + b3[0]
    mu = jnp.mean(y, axis=-1, keepdims=True)
    var = jnp.mean((y - mu) ** 2, axis=-1, keepdims=True)
    return (y - mu) / jnp.sqrt(var + LN_EPS) * gamma[0] + beta[0]


if __name__ == "__main__":
    key = jax.random.PRNGKey(0)
    kx, kp = jax.random.split(key)

    B, T = 2, 8
    x = jax.random.normal(kx, (B, T, EMBED_DIM), jnp.float32)
    params = init_params(kp)

    out = base_head_forward(x, params)
    out = jax.block_until_ready(out)

    ref = reference_forward(x, params)
    assert out.shape == (B, T, OUTPUT_DIM)
    assert jnp.allclose(out, ref, atol=1e-5, rtol=1e-5), "mismatch vs reference"

    print("KERNEL_OK")
</pallas_src>

<mosaic_0001>
module attributes {stable_mosaic.version = 11 : i64} {
  func.func @base_head_kernel(%arg0: i32, %arg1: memref<16x32xf32, #tpu.memory_space<vmem>>, %arg2: memref<32x64xf32, #tpu.memory_space<vmem>>, %arg3: memref<1x64xf32, #tpu.memory_space<vmem>>, %arg4: memref<64x64xf32, #tpu.memory_space<vmem>>, %arg5: memref<1x64xf32, #tpu.memory_space<vmem>>, %arg6: memref<64x16xf32, #tpu.memory_space<vmem>>, %arg7: memref<1x16xf32, #tpu.memory_space<vmem>>, %arg8: memref<1x16xf32, #tpu.memory_space<vmem>>, %arg9: memref<1x16xf32, #tpu.memory_space<vmem>>, %arg10: memref<16x16xf32, #tpu.memory_space<vmem>>) attributes {dimension_semantics = [#tpu.dimension_semantics<parallel>], iteration_bounds = array<i64: 1>, scalar_prefetch = 0 : i64, scratch_operands = 0 : i64, tpu.core_type = #tpu.core_type<tc>, window_params = [{transform_indices = @transform_0, window_bounds = array<i64: 16, 32>}, {pipeline_mode = #tpu.pipeline_mode<synchronous>, transform_indices = @transform_1, window_bounds = array<i64: 32, 64>}, {pipeline_mode = #tpu.pipeline_mode<synchronous>, transform_indices = @transform_2, window_bounds = array<i64: 1, 64>}, {pipeline_mode = #tpu.pipeline_mode<synchronous>, transform_indices = @transform_3, window_bounds = array<i64: 64, 64>}, {pipeline_mode = #tpu.pipeline_mode<synchronous>, transform_indices = @transform_4, window_bounds = array<i64: 1, 64>}, {pipeline_mode = #tpu.pipeline_mode<synchronous>, transform_indices = @transform_5, window_bounds = array<i64: 64, 16>}, {pipeline_mode = #tpu.pipeline_mode<synchronous>, transform_indices = @transform_6, window_bounds = array<i64: 1, 16>}, {pipeline_mode = #tpu.pipeline_mode<synchronous>, transform_indices = @transform_7, window_bounds = array<i64: 1, 16>}, {pipeline_mode = #tpu.pipeline_mode<synchronous>, transform_indices = @transform_8, window_bounds = array<i64: 1, 16>}, {transform_indices = @transform_9, window_bounds = array<i64: 16, 16>}]} {
    %c0 = arith.constant 0 : index
    %c0_0 = arith.constant 0 : index
    %0 = vector.load %arg1[%c0, %c0_0] : memref<16x32xf32, #tpu.memory_space<vmem>>, vector<16x32xf32>
    %c0_1 = arith.constant 0 : index
    %c0_2 = arith.constant 0 : index
    %1 = vector.load %arg3[%c0_1, %c0_2] : memref<1x64xf32, #tpu.memory_space<vmem>>, vector<1x64xf32>
    %c0_3 = arith.constant 0 : index
    %c0_4 = arith.constant 0 : index
    %2 = vector.load %arg5[%c0_3, %c0_4] : memref<1x64xf32, #tpu.memory_space<vmem>>, vector<1x64xf32>
    %c0_5 = arith.constant 0 : index
    %c0_6 = arith.constant 0 : index
    %3 = vector.load %arg7[%c0_5, %c0_6] : memref<1x16xf32, #tpu.memory_space<vmem>>, vector<1x16xf32>
    %c0_7 = arith.constant 0 : index
    %c0_8 = arith.constant 0 : index
    %4 = vector.load %arg8[%c0_7, %c0_8] : memref<1x16xf32, #tpu.memory_space<vmem>>, vector<1x16xf32>
    %c0_9 = arith.constant 0 : index
    %c0_10 = arith.constant 0 : index
    %5 = vector.load %arg9[%c0_9, %c0_10] : memref<1x16xf32, #tpu.memory_space<vmem>>, vector<1x16xf32>
    %c0_11 = arith.constant 0 : index
    %c0_12 = arith.constant 0 : index
    %6 = vector.load %arg2[%c0_11, %c0_12] : memref<32x64xf32, #tpu.memory_space<vmem>>, vector<32x64xf32>
    %cst = arith.constant dense<0.000000e+00> : vector<16x64xf32>
    %7 = tpu.matmul %0, %6, %cst {dimension_numbers = #tpu.dot_dimension_numbers<[1], [0], [0], [1], [0, 0, 1, 1], [], []>} : vector<16x32xf32>, vector<32x64xf32>, vector<16x64xf32> -> vector<16x64xf32>
    %8 = vector.broadcast %1 : vector<1x64xf32> to vector<16x64xf32>
    %9 = arith.addf %7, %8 : vector<16x64xf32>
    %cst_13 = arith.constant 0.000000e+00 : f32
    %10 = vector.broadcast %cst_13 : f32 to vector<16x64xf32>
    %11 = arith.maximumf %9, %10 : vector<16x64xf32>
    %c0_14 = arith.constant 0 : index
    %c0_15 = arith.constant 0 : index
    %12 = vector.load %arg4[%c0_14, %c0_15] : memref<64x64xf32, #tpu.memory_space<vmem>>, vector<64x64xf32>
    %cst_16 = arith.constant dense<0.000000e+00> : vector<16x64xf32>
    %13 = tpu.matmul %11, %12, %cst_16 {dimension_numbers = #tpu.dot_dimension_numbers<[1], [0], [0], [1], [0, 0, 1, 1], [], []>} : vector<16x64xf32>, vector<64x64xf32>, vector<16x64xf32> -> vector<16x64xf32>
    %14 = vector.broadcast %2 : vector<1x64xf32> to vector<16x64xf32>
    %15 = arith.addf %13, %14 : vector<16x64xf32>
    %cst_17 = arith.constant 0.000000e+00 : f32
    %16 = vector.broadcast %cst_17 : f32 to vector<16x64xf32>
    %17 = arith.maximumf %15, %16 : vector<16x64xf32>
    %c0_18 = arith.constant 0 : index
    %c0_19 = arith.constant 0 : index
    %18 = vector.load %arg6[%c0_18, %c0_19] : memref<64x16xf32, #tpu.memory_space<vmem>>, vector<64x16xf32>
    %cst_20 = arith.constant dense<0.000000e+00> : vector<16x16xf32>
    %19 = tpu.matmul %17, %18, %cst_20 {dimension_numbers = #tpu.dot_dimension_numbers<[1], [0], [0], [1], [0, 0, 1, 1], [], []>} : vector<16x64xf32>, vector<64x16xf32>, vector<16x16xf32> -> vector<16x16xf32>
    %20 = vector.broadcast %3 : vector<1x16xf32> to vector<16x16xf32>
    %21 = arith.addf %19, %20 : vector<16x16xf32>
    %cst_21 = arith.constant dense<0.000000e+00> : vector<16xf32>
    %22 = vector.multi_reduction <add>, %21, %cst_21 [1] : vector<16x16xf32> to vector<16xf32>
    %23 = vector.shape_cast %22 : vector<16xf32> to vector<16x1xf32>
    %cst_22 = arith.constant 1.600000e+01 : f32
    %24 = vector.broadcast %cst_22 : f32 to vector<16x1xf32>
    %25 = arith.divf %23, %24 : vector<16x1xf32>
    %26 = vector.broadcast %25 : vector<16x1xf32> to vector<16x16xf32>
    %27 = arith.subf %21, %26 : vector<16x16xf32>
    %28 = arith.mulf %27, %27 : vector<16x16xf32>
    %cst_23 = arith.constant dense<0.000000e+00> : vector<16xf32>
    %29 = vector.multi_reduction <add>, %28, %cst_23 [1] : vector<16x16xf32> to vector<16xf32>
    %30 = vector.shape_cast %29 : vector<16xf32> to vector<16x1xf32>
    %cst_24 = arith.constant 1.600000e+01 : f32
    %31 = vector.broadcast %cst_24 : f32 to vector<16x1xf32>
    %32 = arith.divf %30, %31 : vector<16x1xf32>
    %cst_25 = arith.constant 9.99999974E-6 : f32
    %33 = vector.broadcast %cst_25 : f32 to vector<16x1xf32>
    %34 = arith.addf %32, %33 : vector<16x1xf32>
    %35 = math.rsqrt %34 : vector<16x1xf32>
    %36 = vector.broadcast %35 : vector<16x1xf32> to vector<16x16xf32>
    %37 = arith.mulf %27, %36 : vector<16x16xf32>
    %38 = vector.broadcast %4 : vector<1x16xf32> to vector<16x16xf32>
    %39 = arith.mulf %37, %38 : vector<16x16xf32>
    %40 = vector.broadcast %5 : vector<1x16xf32> to vector<16x16xf32>
    %41 = arith.addf %39, %40 : vector<16x16xf32>
    %c0_26 = arith.constant 0 : index
    %c0_27 = arith.constant 0 : index
    %42 = vector.load %arg10[%c0_26, %c0_27] : memref<16x16xf32, #tpu.memory_space<vmem>>, vector<16x16xf32>
    tpu.vector_store %arg10[%c0_26, %c0_27], %41 {strides = array<i32>} : memref<16x16xf32, #tpu.memory_space<vmem>>, vector<16x16xf32>,
    return
  }
  func.func @transform_0(%arg0: i32) -> (i32, i32) {
    %c0_i32 = arith.constant 0 : i32
    %c0_i32_0 = arith.constant 0 : i32
    return %arg0, %c0_i32 : i32, i32
  }
  func.func @transform_1(%arg0: i32) -> (i32, i32) {
    %c0_i32 = arith.constant 0 : i32
    %c0_i32_0 = arith.constant 0 : i32
    %c0_i32_1 = arith.constant 0 : i32
    return %c0_i32, %c0_i32_0 : i32, i32
  }
  func.func @transform_2(%arg0: i32) -> (i32, i32) {
    %c0_i32 = arith.constant 0 : i32
    %c0_i32_0 = arith.constant 0 : i32
    %c0_i32_1 = arith.constant 0 : i32
    return %c0_i32, %c0_i32_0 : i32, i32
  }
  func.func @transform_3(%arg0: i32) -> (i32, i32) {
    %c0_i32 = arith.constant 0 : i32
    %c0_i32_0 = arith.constant 0 : i32
    %c0_i32_1 = arith.constant 0 : i32
    return %c0_i32, %c0_i32_0 : i32, i32
  }
  func.func @transform_4(%arg0: i32) -> (i32, i32) {
    %c0_i32 = arith.constant 0 : i32
    %c0_i32_0 = arith.constant 0 : i32
    %c0_i32_1 = arith.constant 0 : i32
    return %c0_i32, %c0_i32_0 : i32, i32
  }
  func.func @transform_5(%arg0: i32) -> (i32, i32) {
    %c0_i32 = arith.constant 0 : i32
    %c0_i32_0 = arith.constant 0 : i32
    %c0_i32_1 = arith.constant 0 : i32
    return %c0_i32, %c0_i32_0 : i32, i32
  }
  func.func @transform_6(%arg0: i32) -> (i32, i32) {
    %c0_i32 = arith.constant 0 : i32
    %c0_i32_0 = arith.constant 0 : i32
    %c0_i32_1 = arith.constant 0 : i32
    return %c0_i32, %c0_i32_0 : i32, i32
  }
  func.func @transform_7(%arg0: i32) -> (i32, i32) {
    %c0_i32 = arith.constant 0 : i32
    %c0_i32_0 = arith.constant 0 : i32
    %c0_i32_1 = arith.constant 0 : i32
    return %c0_i32, %c0_i32_0 : i32, i32
  }
  func.func @transform_8(%arg0: i32) -> (i32, i32) {
    %c0_i32 = arith.constant 0 : i32
    %c0_i32_0 = arith.constant 0 : i32
    %c0_i32_1 = arith.constant 0 : i32
    return %c0_i32, %c0_i32_0 : i32, i32
  }
  func.func @transform_9(%arg0: i32) -> (i32, i32) {
    %c0_i32 = arith.constant 0 : i32
    %c0_i32_0 = arith.constant 0 : i32
    return %arg0, %c0_i32 : i32, i32
  }
}

</mosaic_0001>

<bundles_post_ra>
// kernel: tpu_custom_call.1
= control target key start
LH: loop header
LB: loop body
LE: loop exit
PB: predicated region body
PF: predicated region fallthrough
CT: control target
= control target key end

     0   :  { %14 = vsyncpa [#allocation3], 0  ;;  %s489_s0 = inlined_call_operand.vmem [shape: f32[16,32], index: 0, kind: input, shape index: {}]   ;;  %s490_s1 = inlined_call_operand.hbm [shape: f32[32,64], index: 1, kind: input, shape index: {}]   ;;  %s491_s2 = inlined_call_operand.vmem [shape: f32[1,64], index: 2, kind: input, shape index: {}]   ;;  %s492_s3 = inlined_call_operand.vmem [shape: f32[64,64], index: 3, kind: input, shape index: {}]   ;;  %s493_s4 = inlined_call_operand.vmem [shape: f32[1,64], index: 4, kind: input, shape index: {}]   ;;  %s494_s5 = inlined_call_operand.vmem [shape: f32[64,16], index: 5, kind: input, shape index: {}]   ;;  %s495_s6 = inlined_call_operand.vmem [shape: f32[1,16], index: 6, kind: input, shape index: {}]   ;;  %s496_s7 = inlined_call_operand.vmem [shape: f32[1,16], index: 7, kind: input, shape index: {}]   ;;  %s497_s8 = inlined_call_operand.vmem [shape: f32[1,16], index: 8, kind: input, shape index: {}]   ;;  %s498_s9 = inlined_call_operand.hbm [shape: f32[16,16], index: 9, kind: output, shape index: {}]  }
   0x1   :  { %15 = vsyncpa [#allocation4], 0  ;;  %s22_s11 = sshll.u32 %s490_s1, 4  ;;  %s343_s12 = smov [#allocation2]   ;;  %s23_s11 = int_to_ptr.hbm [resolvable:$true] %s22_s11 }
   0x2   :  { %s24_s13 = sshll.u32 %s343_s12, 4  ;;  %s344_s14 = smov 128   ;;  %s25_s13 = int_to_ptr.vmem [resolvable:$true] %s24_s13 }
   0x3   :  { %s345_s15 = smov 8  }
   0x4   :  { %30 = dma.hbm_to_vmem [thread:$0]  %s23_s11, 512, %s25_s13, [#allocation3], %s344_s14, %s344_s14, %s345_s15  }
   0x5   :  { %339 = dma.done.wait [#allocation3], 512  }
   0x6   :  { %340 = vsyncadd [#allocation3], 4294966784  ;;  %v59_v0 = vld [vmem:[#allocation2 + $0x18] sm:$0xff]  ;;  %v58_v1 = vld [vmem:[#allocation2 + $0x10] sm:$0xff]  ;;  %vm63_vm0 = vcmask 261120   ;;  %vm106_vm1 = vcmask 523264  }
   0x7   :  { %82 = vmatpush.msra.mxu0 %v59_v0  ;;  %v57_v2 = vld [vmem:[#allocation2 + $0x8] sm:$0xff]  ;;  %v102_v3 = vld [vmem:[%s492_s3 + $0x38] sm:$0xff]  ;;  %v101_v4 = vld [vmem:[%s492_s3 + $0x30] sm:$0xff]  ;;  %vm178_vm2 = vcmask 130048   ;;  %v346_v43 = vmov 16.0  }
   0x8   :  { %v56_v5 = vld [vmem:[#allocation2] sm:$0xff]  ;;  %121 = vmatpush.msra.mxu1 %v102_v3  ;;  %v100_v6 = vld [vmem:[%s492_s3 + $0x28] sm:$0xff]  ;;  %267 = vmatpush.msra.mxu3 %v102_v3  ;;  %v98_v9 = vld [vmem:[%s492_s3 + $0x18] sm:$0xff]  ;;  %285 = vrcp.f32 %v346_v43 }
   0x9   :  { %83 = vmatpush.msra.mxu0 %v58_v1  ;;  %v49_v7 = vld [vmem:[%s489_s0] sm:$0xff]  ;;  %v50_v10 = vld [vmem:[%s489_s0 + $0x8] sm:$0xff]  ;;  %v97_v11 = vld [vmem:[%s492_s3 + $0x10] sm:$0xff] }
   0xa   :  { %122 = vmatpush.msra.mxu1 %v101_v4  ;;  %v99_v8 = vld [vmem:[%s492_s3 + $0x20] sm:$0xff]  ;;  %268 = vmatpush.msra.mxu3 %v101_v4  ;;  %v96_v12 = vld [vmem:[%s492_s3 + $0x8] sm:$0xff]  ;;  %v145_v14 = vld [vmem:[%s494_s5 + $0x38] sm:$0xff] }
   0xb   :  { %84 = vmatpush.msra.mxu0 %v57_v2  ;;  %v95_v13 = vld [vmem:[%s492_s3] sm:$0xff]  ;;  %v144_v15 = vld [vmem:[%s494_s5 + $0x30] sm:$0xff]  ;;  %163 = vmatpush.msra.mxu2 %v145_v14  ;;  %v143_v16 = vld [vmem:[%s494_s5 + $0x28] sm:$0xff] }
   0xc   :  { %123 = vmatpush.msra.mxu1 %v100_v6  ;;  %269 = vmatpush.msra.mxu3 %v100_v6  ;;  %v142_v17 = vld [vmem:[%s494_s5 + $0x20] sm:$0xff]  ;;  %v141_v18 = vld [vmem:[%s494_s5 + $0x18] sm:$0xff]  ;;  %v140_v26 = vld [vmem:[%s494_s5 + $0x10] sm:$0xff] }
   0xd   :  { %85 = vmatpush.msra.mxu0 %v56_v5  ;;  %164 = vmatpush.msra.mxu2 %v144_v15  ;;  %v280_v19 = vld [vmem:[%s491_s2] ss:$0 sm:$0xff]  ;;  %v139_v27 = vld [vmem:[%s494_s5 + $0x8] sm:$0xff] }
   0xe   :  { %261 = vmatmul.msk.f32.vlgmr.msra.gmra.mxu0 %vm63_vm0, %v49_v7  ;;  %124 = vmatpush.msra.mxu1 %v99_v8  ;;  %v138_v28 = vld [vmem:[%s494_s5] sm:$0xff]  ;;  %v286_v44 = vpop.eup %285 }
   0xf   :  { %270 = vmatpush.msra.mxu3 %v99_v8  ;;  %165 = vmatpush.msra.mxu2 %v143_v16  ;;  %v281_v29 = vld [vmem:[%s493_s4] ss:$0 sm:$0xff]  ;;  %v186_v45 = vmul.f32 16.0, %v286_v44  ;;  %vm190_vm3 = vweird.f32 %v286_v44 }
  0x10   :  { %125 = vmatpush.msra.mxu1 %v98_v9  ;;  %v282_v36 = vld [vmem:[%s495_s6] ss:$0 sm:$0xff] }
  0x11   :  { %271 = vmatpush.msra.mxu3 %v98_v9  ;;  %166 = vmatpush.msra.mxu2 %v142_v17  ;;  %v187_v46 = vsub.f32 1.0, %v186_v45  ;;  %v283_v8 = vld [vmem:[%s496_s7] ss:$0 sm:$0xff]  ;;  %s347_s7 = smov [#allocation5]  }
  0x12   :  { %126 = vmatpush.msra.mxu1 %v97_v11  ;;  %s246_s0 = sshll.u32 %s347_s7, 4  ;;  %s247_s0 = int_to_ptr.vmem [resolvable:$true] %s246_s0 }
  0x13   :  { %272 = vmatpush.msra.mxu3 %v97_v11  ;;  %167 = vmatpush.msra.mxu2 %v141_v18  ;;  %v188_v47 = vmul.f32 %v286_v44, %v187_v46  ;;  %v284_v11 = vld [vmem:[%s497_s8] ss:$0 sm:$0xff]  ;;  %s248_s8 = sshll.u32 %s498_s9, 4  ;;  %s249_s8 = int_to_ptr.hbm [resolvable:$true] %s248_s8 }
  0x14   :  { %127 = vmatpush.msra.mxu1 %v96_v12 }
  0x15   :  { %273 = vmatpush.msra.mxu3 %v96_v12  ;;  %168 = vmatpush.msra.mxu2 %v140_v26  ;;  %v189_v48 = vadd.f32 %v286_v44, %v188_v47 }
  0x16   :  { %262 = vmatmul.msk.f32.gmra.mxu0 %vm63_vm0, %v50_v10  ;;  %128 = vmatpush.msra.mxu1 %v95_v13 }
  0x17   :  { %274 = vmatpush.msra.mxu3 %v95_v13  ;;  %169 = vmatpush.msra.mxu2 %v139_v27  ;;  %v191_v49 = vsel %vm190_vm3, %v286_v44, %v189_v48 }
  0x19   :  { %170 = vmatpush.msra.mxu2 %v138_v28 }
  0x8b   :  { %v87_v20 = vpop.f32.mrf.mxu0 }
  0x8c   :  { %v88_v21 = vadd.f32 %v280_v19, %v87_v20 }
  0x8e   :  { %v93_v22 = vmax.f32 %v88_v21, 0.0 }
  0x90   :  { %263 = vmatmul.msk.f32.vlgmr.msra.gmra.mxu1 %vm106_vm1, %v93_v22 }
  0x93   :  { %v90_v23 = vpop.f32.mrf.mxu0 }
  0x94   :  { %v91_v24 = vadd.f32 %v280_v19, %v90_v23 }
  0x96   :  { %v94_v25 = vmax.f32 %v91_v24, 0.0 }
  0x98   :  { %264 = vmatmul.msk.f32.vlgmr.msra.gmra.mxu3 %vm106_vm1, %v94_v25 }
 0x10d   :  { %v130_v30 = vpop.f32.mrf.mxu1 }
 0x10e   :  { %v131_v31 = vadd.f32 %v281_v29, %v130_v30 }
 0x110   :  { %v136_v32 = vmax.f32 %v131_v31, 0.0 }
 0x112   :  { %265 = vmatmul.msk.f32.vlgmr.msra.gmra.mxu2 %vm106_vm1, %v136_v32 }
 0x11b   :  { %v133_v33 = vpop.f32.mrf.mxu3 }
 0x11c   :  { %v134_v34 = vadd.f32 %v281_v29, %v133_v33 }
 0x11e   :  { %v137_v35 = vmax.f32 %v134_v34, 0.0 }
 0x120   :  { %266 = vmatmul.msk.f32.gmra.mxu2 %vm106_vm1, %v137_v35 }
 0x195   :  { %v172_v37 = vpop.f32.mrf.mxu2 }
 0x196   :  { %v173_v38 = vadd.f32 %v282_v36, %v172_v37 }
 0x198   :  { %v179_v39 = vsel %vm178_vm2, %v173_v38, 0.0 }
 0x199   :  { %180 = vadd.xlane.f32.xlu0 %v179_v39 }
 0x1a3   :  { %v175_v40 = vpop.f32.mrf.mxu2 }
 0x1a4   :  { %v176_v41 = vadd.f32 %v282_v36, %v175_v40 }
 0x1a6   :  { %v182_v42 = vsel %vm178_vm2, %v176_v41, 0.0 }
 0x1a7   :  { %183 = vadd.xlane.f32.xlu0 %v182_v42 }
 0x20c   :  { %v181_v50 = vpop.xlane.xlu0 %180 }
 0x20d   :  { %v192_v51 = vmul.f32 %v191_v49, %v181_v50 }
 0x20f   :  { %v194_v52 = vsub.f32 %v173_v38, %v192_v51 }
 0x211   :  { %v196_v53 = vmul.f32 %v194_v52, %v194_v52 }
 0x213   :  { %v198_v54 = vsel %vm178_vm2, %v196_v53, 0.0 }
 0x214   :  { %199 = vadd.xlane.f32.xlu1 %v198_v54 }
 0x21a   :  { %v184_v55 = vpop.xlane.xlu0 %183 }
 0x21b   :  { %v193_v56 = vmul.f32 %v191_v49, %v184_v55 }
 0x21d   :  { %v195_v57 = vsub.f32 %v176_v41, %v193_v56 }
 0x21f   :  { %v197_v58 = vmul.f32 %v195_v57, %v195_v57 }
 0x221   :  { %v201_v59 = vsel %vm178_vm2, %v197_v58, 0.0 }
 0x222   :  { %202 = vadd.xlane.f32.xlu1 %v201_v59 }
 0x287   :  { %v200_v60 = vpop.xlane.xlu1 %199 }
 0x288   :  { %v204_v61 = vmul.f32 %v200_v60, %v191_v49 }
 0x28a   :  { %v206_v62 = vadd.f32 1e-05, %v204_v61 }
 0x28c   :  { %287 = vrsqrt.f32 %v206_v62  ;;  %vm214_vm5 = vweird.f32 %v206_v62 }
 0x292   :  { %v288_v63 = vpop.eup %287 }
 0x293   :  { %v209_v0 = vmul.f32 %v288_v63, %v206_v62  ;;  %vm215_vm4 = vweird.f32 %v288_v63 }
 0x294   :  { %vm216_vm6 = vmor %vm214_vm5, %vm215_vm4 }
 0x295   :  { %v210_v1 = vmul.f32 %v288_v63, %v209_v0  ;;  %v203_v2 = vpop.xlane.xlu1 %202 }
 0x296   :  { %v205_v3 = vmul.f32 %v203_v2, %v191_v49 }
 0x297   :  { %v211_v4 = vmul.f32 0.5, %v210_v1 }
 0x298   :  { %v207_v5 = vadd.f32 1e-05, %v205_v3 }
 0x299   :  { %v212_v6 = vsub.f32 1.5, %v211_v4 }
 0x29a   :  { %289 = vrsqrt.f32 %v207_v5  ;;  %vm224_vm8 = vweird.f32 %v207_v5 }
 0x29b   :  { %v213_v7 = vmul.f32 %v288_v63, %v212_v6 }
 0x29d   :  { %v217_v9 = vsel %vm216_vm6, %v288_v63, %v213_v7 }
 0x29e   :  { %v228_v10 = vmul.f32 %v217_v9, %v194_v52 }
 0x2a0   :  { %v290_v12 = vpop.eup %289  ;;  %v233_v13 = vmul.f32 %v283_v8, %v228_v10 }
 0x2a1   :  { %v219_v14 = vmul.f32 %v290_v12, %v207_v5  ;;  %vm225_vm7 = vweird.f32 %v290_v12 }
 0x2a2   :  { %v238_v15 = vadd.f32 %v284_v11, %v233_v13  ;;  %vm226_vm9 = vmor %vm224_vm8, %vm225_vm7 }
 0x2a3   :  { %v220_v16 = vmul.f32 %v290_v12, %v219_v14 }
 0x2a4   :  { %240 = vst.msk [vmem:[#allocation5] sm:$0xff] %vm178_vm2, %v238_v15 }
 0x2a5   :  { %v221_v17 = vmul.f32 0.5, %v220_v16 }
 0x2a7   :  { %v222_v18 = vsub.f32 1.5, %v221_v17 }
 0x2a9   :  { %v223_v19 = vmul.f32 %v290_v12, %v222_v18 }
 0x2ab   :  { %v227_v20 = vsel %vm226_vm9, %v290_v12, %v223_v19 }
 0x2ac   :  { %v229_v21 = vmul.f32 %v227_v20, %v195_v57 }
 0x2ae   :  { %v234_v22 = vmul.f32 %v283_v8, %v229_v21 }
 0x2b0   :  { %v239_v23 = vadd.f32 %v284_v11, %v234_v22 }
 0x2b2   :  { %241 = vst.msk [vmem:[#allocation5 + $0x8] sm:$0xff] %vm178_vm2, %v239_v23 }
 0x2b3   :  { %254 = dma.vmem_to_hbm [thread:$0]  %s247_s0, 256, %s249_s8, [#allocation4], %s344_s14, %s344_s14, %s345_s15  }
 0x2b4   :  { %341 = dma.done.wait [#allocation4], 256  }
 0x2b5   :  { %342 = vsyncadd [#allocation4], 4294967040 }
 0x2b6   :  { %259 = vsyncpa [#allocation3], 1 }
 0x2b7   :  { %260 = vsyncpa [#allocation4], 1 }

</bundles_post_ra>
